<compile_context>
chip_gen: v6e
topology: v6e:2x2x1
jax: 0.10.0
libtpu: 0.0.40
codegen_flags: <defaults>
</compile_context>

<pallas_src>
import functools

import jax
import jax.numpy as jnp
from jax import lax
from jax.experimental import pallas as pl
from jax.experimental.pallas import tpu as pltpu

EPS = 1e-5

# Column order inside the packed per-feature vector slab.
# (gamma1, beta1, gamma2, beta2, gamma3, beta3, bias4)
_VEC_COLS = ("g1", "be1", "g2", "be2", "g3", "be3", "b4")


def _nn4lbn_kernel(x_ref, w_ref, vec_ref, o_ref, *, n_in, n1, n2, n3):
    """Whole-batch feature-major forward pass.

    x_ref   : [n_in, B]        input, feature-major (batch on the lane axis)
    w_ref   : [n1+n2+n3+1, C]  packed weights, PyTorch (out, in) layout
    vec_ref : [maxn, 7]        packed per-feature vectors (columns = _VEC_COLS)
    o_ref   : [1, B]           lane-dense output
    """
    r2 = n1
    r3 = n1 + n2
    r4 = n1 + n2 + n3

    def bn_relu(h, n, col):
        # h: [n, B] feature-major.  vec columns (col, col+1) = (gamma, beta).
        # Pre-BN Linear bias omitted: cancelled exactly by the batch-mean
        # subtraction (shift invariance of mean/var).
        g = vec_ref[:n, col:col + 1]                                  # [n, 1]
        be = vec_ref[:n, col + 1:col + 2]                             # [n, 1]
        mean = jnp.mean(h, axis=1, keepdims=True)                     # lane reduce
        var = jnp.mean(h * h, axis=1, keepdims=True) - mean * mean    # E[h^2]-m^2
        var = jnp.maximum(var, 0.0)
        h = (h - mean) * lax.rsqrt(var + EPS) * g + be                # rsqrt -> EUP
        return jnp.maximum(h, 0.0)

    x = x_ref[...].astype(jnp.float32)                                # [n_in, B]

    # ----- Layer 1: Linear -> BN -> ReLU -----
    h = jnp.dot(w_ref[:r2, :n_in], x,
                preferred_element_type=jnp.float32)                   # [n1, B]
    h = bn_relu(h, n1, 0)

    # ----- Layer 2: Linear -> BN -> ReLU -----
    h = jnp.dot(w_ref[r2:r3, :n1], h,
                preferred_element_type=jnp.float32)                   # [n2, B]
    h = bn_relu(h, n2, 2)

    # ----- Layer 3: Linear -> BN -> ReLU -----
    h = jnp.dot(w_ref[r3:r4, :n2], h,
                preferred_element_type=jnp.float32)                   # [n3, B]
    h = bn_relu(h, n3, 4)

    # ----- Layer 4: Linear(n3 -> 1) + bias, lane-dense [1, B] result -----
    out = jnp.dot(w_ref[r4:r4 + 1, :n3], h,
                  preferred_element_type=jnp.float32) + vec_ref[0:1, 6:7]
    o_ref[...] = out.astype(o_ref.dtype)


def prepare_params(params):
    """One-time packing of PyTorch-layout params into two VMEM slabs."""
    w1, w2, w3, w4 = params["w1"], params["w2"], params["w3"], params["w4"]
    n1, n_in = w1.shape
    n2 = w2.shape[0]
    n3 = w3.shape[0]
    c = max(n_in, n1, n2, n3)
    maxn = max(n1, n2, n3)

    def pad_cols(wm):
        return jnp.pad(wm.astype(jnp.float32), ((0, 0), (0, c - wm.shape[1])))

    w_slab = jnp.concatenate(
        [pad_cols(w1), pad_cols(w2), pad_cols(w3), pad_cols(w4)], axis=0)

    def pad_vec(v):
        v = v.astype(jnp.float32).reshape(-1)
        return jnp.pad(v, (0, maxn - v.shape[0]))

    vec_slab = jnp.stack([pad_vec(params[name]) for name in _VEC_COLS], axis=1)

    dims = dict(n_in=n_in, n1=n1, n2=n2, n3=n3)
    return w_slab, vec_slab, dims


def nn_4lbn_forward(x, packed):
    """x: [B, n_in].  packed: output of prepare_params.  Returns [B, 1] f32."""
    w_slab, vec_slab, dims = packed
    b = x.shape[0]

    # Single wrapper-side transpose to feature-major; no wrapper-side dtype
    # cast (the kernel casts), so narrow inputs DMA at their native width.
    x_fm = x.T                                                        # [n_in, B]

    kernel = functools.partial(_nn4lbn_kernel, **dims)
    vmem = pl.BlockSpec(memory_space=pltpu.MemorySpace.VMEM)

    flops = 2 * b * (dims["n_in"] * dims["n1"] + dims["n1"] * dims["n2"]
                     + dims["n2"] * dims["n3"] + dims["n3"])
    bytes_accessed = (x.dtype.itemsize * x.size
                      + 4 * (w_slab.size + vec_slab.size) + 4 * b)

    out = pl.pallas_call(
        kernel,
        out_shape=jax.ShapeDtypeStruct((1, b), jnp.float32),
        in_specs=[vmem, vmem, vmem],
        out_specs=vmem,
        cost_estimate=pl.CostEstimate(
            flops=flops,
            transcendentals=dims["n1"] + dims["n2"] + dims["n3"],
            bytes_accessed=bytes_accessed),
    )(x_fm, w_slab, vec_slab)

    # Kernel writes lane-dense [1, B]; present it as the module's [B, 1].
    return out.reshape(b, 1)


def _ref_forward(x, params):
    """Pure-JAX reference mirroring PyTorch training-mode semantics."""
    def bn(h, g, be):
        m = jnp.mean(h, axis=0)
        v = jnp.var(h, axis=0)            # biased variance (ddof=0)
        return (h - m) / jnp.sqrt(v + EPS) * g + be

    h = x @ params["w1"].T + params["b1"]
    h = jnp.maximum(bn(h, params["g1"], params["be1"]), 0.0)
    h = h @ params["w2"].T + params["b2"]
    h = jnp.maximum(bn(h, params["g2"], params["be2"]), 0.0)
    h = h @ params["w3"].T + params["b3"]
    h = jnp.maximum(bn(h, params["g3"], params["be3"]), 0.0)
    return h @ params["w4"].T + params["b4"]


if __name__ == "__main__":
    # Small shapes consistent with the module: n_inputs=16, n1=32, n2=32, n3=16.
    B, n_in, n1, n2, n3 = 8, 16, 32, 32, 16

    key = jax.random.PRNGKey(0)
    ks = jax.random.split(key, 12)

    params = {
        # PyTorch Linear layout: weight (out, in), bias (out,)
        "w1": jax.random.normal(ks[0], (n1, n_in), jnp.float32) * 0.1,
        "b1": jax.random.normal(ks[1], (n1,), jnp.float32) * 0.1,
        "g1": jnp.ones((n1,), jnp.float32) * 1.1,    # BatchNorm gamma
        "be1": jnp.ones((n1,), jnp.float32) * 0.05,  # BatchNorm beta
        "w2": jax.random.normal(ks[2], (n2, n1), jnp.float32) * 0.1,
        "b2": jax.random.normal(ks[3], (n2,), jnp.float32) * 0.1,
        "g2": jnp.ones((n2,), jnp.float32) * 0.9,
        "be2": jnp.ones((n2,), jnp.float32) * -0.05,
        "w3": jax.random.normal(ks[4], (n3, n2), jnp.float32) * 0.1,
        "b3": jax.random.normal(ks[5], (n3,), jnp.float32) * 0.1,
        "g3": jnp.ones((n3,), jnp.float32),
        "be3": jnp.zeros((n3,), jnp.float32),
        "w4": jax.random.normal(ks[6], (1, n3), jnp.float32) * 0.1,
        "b4": jax.random.normal(ks[7], (1,), jnp.float32) * 0.1,
    }

    x = jax.random.normal(ks[8], (B, n_in), jnp.float32)

    packed = prepare_params(params)          # one-time packing (hoisted)
    out = nn_4lbn_forward(x, packed)
    out = jax.block_until_ready(out)

    # Reference still includes b1..b3; the kernel omits them because BN's
    # per-batch mean subtraction cancels them exactly — differences are pure
    # floating-point rounding.
    ref = _ref_forward(x, params)
    assert out.shape == (B, 1), out.shape
    assert jnp.allclose(out, ref, atol=2e-4, rtol=2e-4), (out, ref)

    print("KERNEL_OK")
</pallas_src>

<mosaic_0001>
module attributes {stable_mosaic.version = 11 : i64} {
  func.func @_nn4lbn_kernel(%arg0: memref<16x8xf32, #tpu.memory_space<vmem>>, %arg1: memref<81x32xf32, #tpu.memory_space<vmem>>, %arg2: memref<32x7xf32, #tpu.memory_space<vmem>>, %arg3: memref<1x8xf32, #tpu.memory_space<vmem>>) attributes {dimension_semantics = [], scalar_prefetch = 0 : i64, scratch_operands = 0 : i64, tpu.core_type = #tpu.core_type<tc>} {
    %c0 = arith.constant 0 : index
    %c0_0 = arith.constant 0 : index
    %0 = vector.load %arg0[%c0, %c0_0] : memref<16x8xf32, #tpu.memory_space<vmem>>, vector<16x8xf32>
    %c0_1 = arith.constant 0 : index
    %c0_2 = arith.constant 0 : index
    %1 = vector.load %arg1[%c0_1, %c0_2] : memref<81x32xf32, #tpu.memory_space<vmem>>, vector<32x16xf32>
    %cst = arith.constant dense<0.000000e+00> : vector<32x8xf32>
    %2 = tpu.matmul %1, %0, %cst {dimension_numbers = #tpu.dot_dimension_numbers<[1], [0], [0], [1], [0, 0, 1, 1], [], []>} : vector<32x16xf32>, vector<16x8xf32>, vector<32x8xf32> -> vector<32x8xf32>
    %c0_3 = arith.constant 0 : index
    %c0_4 = arith.constant 0 : index
    %3 = vector.load %arg2[%c0_3, %c0_4] : memref<32x7xf32, #tpu.memory_space<vmem>>, vector<32x1xf32>
    %c0_5 = arith.constant 0 : index
    %c1 = arith.constant 1 : index
    %4 = vector.load %arg2[%c0_5, %c1] : memref<32x7xf32, #tpu.memory_space<vmem>>, vector<32x1xf32>
    %cst_6 = arith.constant dense<0.000000e+00> : vector<32xf32>
    %5 = vector.multi_reduction <add>, %2, %cst_6 [1] : vector<32x8xf32> to vector<32xf32>
    %6 = vector.shape_cast %5 : vector<32xf32> to vector<32x1xf32>
    %cst_7 = arith.constant 8.000000e+00 : f32
    %7 = vector.broadcast %cst_7 : f32 to vector<32x1xf32>
    %8 = arith.divf %6, %7 : vector<32x1xf32>
    %9 = arith.mulf %2, %2 : vector<32x8xf32>
    %cst_8 = arith.constant dense<0.000000e+00> : vector<32xf32>
    %10 = vector.multi_reduction <add>, %9, %cst_8 [1] : vector<32x8xf32> to vector<32xf32>
    %11 = vector.shape_cast %10 : vector<32xf32> to vector<32x1xf32>
    %cst_9 = arith.constant 8.000000e+00 : f32
    %12 = vector.broadcast %cst_9 : f32 to vector<32x1xf32>
    %13 = arith.divf %11, %12 : vector<32x1xf32>
    %14 = arith.mulf %8, %8 : vector<32x1xf32>
    %15 = arith.subf %13, %14 : vector<32x1xf32>
    %cst_10 = arith.constant 0.000000e+00 : f32
    %16 = vector.broadcast %cst_10 : f32 to vector<32x1xf32>
    %17 = arith.maximumf %15, %16 : vector<32x1xf32>
    %18 = vector.broadcast %8 : vector<32x1xf32> to vector<32x8xf32>
    %19 = arith.subf %2, %18 : vector<32x8xf32>
    %cst_11 = arith.constant 9.99999974E-6 : f32
    %20 = vector.broadcast %cst_11 : f32 to vector<32x1xf32>
    %21 = arith.addf %17, %20 : vector<32x1xf32>
    %22 = math.rsqrt %21 : vector<32x1xf32>
    %23 = vector.broadcast %22 : vector<32x1xf32> to vector<32x8xf32>
    %24 = arith.mulf %19, %23 : vector<32x8xf32>
    %25 = vector.broadcast %3 : vector<32x1xf32> to vector<32x8xf32>
    %26 = arith.mulf %24, %25 : vector<32x8xf32>
    %27 = vector.broadcast %4 : vector<32x1xf32> to vector<32x8xf32>
    %28 = arith.addf %26, %27 : vector<32x8xf32>
    %cst_12 = arith.constant 0.000000e+00 : f32
    %29 = vector.broadcast %cst_12 : f32 to vector<32x8xf32>
    %30 = arith.maximumf %28, %29 : vector<32x8xf32>
    %c32 = arith.constant 32 : index
    %c0_13 = arith.constant 0 : index
    %31 = vector.load %arg1[%c32, %c0_13] : memref<81x32xf32, #tpu.memory_space<vmem>>, vector<32x32xf32>
    %cst_14 = arith.constant dense<0.000000e+00> : vector<32x8xf32>
    %32 = tpu.matmul %31, %30, %cst_14 {dimension_numbers = #tpu.dot_dimension_numbers<[1], [0], [0], [1], [0, 0, 1, 1], [], []>} : vector<32x32xf32>, vector<32x8xf32>, vector<32x8xf32> -> vector<32x8xf32>
    %c0_15 = arith.constant 0 : index
    %c2 = arith.constant 2 : index
    %33 = vector.load %arg2[%c0_15, %c2] : memref<32x7xf32, #tpu.memory_space<vmem>>, vector<32x1xf32>
    %c0_16 = arith.constant 0 : index
    %c3 = arith.constant 3 : index
    %34 = vector.load %arg2[%c0_16, %c3] : memref<32x7xf32, #tpu.memory_space<vmem>>, vector<32x1xf32>
    %cst_17 = arith.constant dense<0.000000e+00> : vector<32xf32>
    %35 = vector.multi_reduction <add>, %32, %cst_17 [1] : vector<32x8xf32> to vector<32xf32>
    %36 = vector.shape_cast %35 : vector<32xf32> to vector<32x1xf32>
    %cst_18 = arith.constant 8.000000e+00 : f32
    %37 = vector.broadcast %cst_18 : f32 to vector<32x1xf32>
    %38 = arith.divf %36, %37 : vector<32x1xf32>
    %39 = arith.mulf %32, %32 : vector<32x8xf32>
    %cst_19 = arith.constant dense<0.000000e+00> : vector<32xf32>
    %40 = vector.multi_reduction <add>, %39, %cst_19 [1] : vector<32x8xf32> to vector<32xf32>
    %41 = vector.shape_cast %40 : vector<32xf32> to vector<32x1xf32>
    %cst_20 = arith.constant 8.000000e+00 : f32
    %42 = vector.broadcast %cst_20 : f32 to vector<32x1xf32>
    %43 = arith.divf %41, %42 : vector<32x1xf32>
    %44 = arith.mulf %38, %38 : vector<32x1xf32>
    %45 = arith.subf %43, %44 : vector<32x1xf32>
    %cst_21 = arith.constant 0.000000e+00 : f32
    %46 = vector.broadcast %cst_21 : f32 to vector<32x1xf32>
    %47 = arith.maximumf %45, %46 : vector<32x1xf32>
    %48 = vector.broadcast %38 : vector<32x1xf32> to vector<32x8xf32>
    %49 = arith.subf %32, %48 : vector<32x8xf32>
    %cst_22 = arith.constant 9.99999974E-6 : f32
    %50 = vector.broadcast %cst_22 : f32 to vector<32x1xf32>
    %51 = arith.addf %47, %50 : vector<32x1xf32>
    %52 = math.rsqrt %51 : vector<32x1xf32>
    %53 = vector.broadcast %52 : vector<32x1xf32> to vector<32x8xf32>
    %54 = arith.mulf %49, %53 : vector<32x8xf32>
    %55 = vector.broadcast %33 : vector<32x1xf32> to vector<32x8xf32>
    %56 = arith.mulf %54, %55 : vector<32x8xf32>
    %57 = vector.broadcast %34 : vector<32x1xf32> to vector<32x8xf32>
    %58 = arith.addf %56, %57 : vector<32x8xf32>
    %cst_23 = arith.constant 0.000000e+00 : f32
    %59 = vector.broadcast %cst_23 : f32 to vector<32x8xf32>
    %60 = arith.maximumf %58, %59 : vector<32x8xf32>
    %c64 = arith.constant 64 : index
    %c0_24 = arith.constant 0 : index
    %61 = vector.load %arg1[%c64, %c0_24] : memref<81x32xf32, #tpu.memory_space<vmem>>, vector<16x32xf32>
    %cst_25 = arith.constant dense<0.000000e+00> : vector<16x8xf32>
    %62 = tpu.matmul %61, %60, %cst_25 {dimension_numbers = #tpu.dot_dimension_numbers<[1], [0], [0], [1], [0, 0, 1, 1], [], []>} : vector<16x32xf32>, vector<32x8xf32>, vector<16x8xf32> -> vector<16x8xf32>
    %c0_26 = arith.constant 0 : index
    %c4 = arith.constant 4 : index
    %63 = vector.load %arg2[%c0_26, %c4] : memref<32x7xf32, #tpu.memory_space<vmem>>, vector<16x1xf32>
    %c0_27 = arith.constant 0 : index
    %c5 = arith.constant 5 : index
    %64 = vector.load %arg2[%c0_27, %c5] : memref<32x7xf32, #tpu.memory_space<vmem>>, vector<16x1xf32>
    %cst_28 = arith.constant dense<0.000000e+00> : vector<16xf32>
    %65 = vector.multi_reduction <add>, %62, %cst_28 [1] : vector<16x8xf32> to vector<16xf32>
    %66 = vector.shape_cast %65 : vector<16xf32> to vector<16x1xf32>
    %cst_29 = arith.constant 8.000000e+00 : f32
    %67 = vector.broadcast %cst_29 : f32 to vector<16x1xf32>
    %68 = arith.divf %66, %67 : vector<16x1xf32>
    %69 = arith.mulf %62, %62 : vector<16x8xf32>
    %cst_30 = arith.constant dense<0.000000e+00> : vector<16xf32>
    %70 = vector.multi_reduction <add>, %69, %cst_30 [1] : vector<16x8xf32> to vector<16xf32>
    %71 = vector.shape_cast %70 : vector<16xf32> to vector<16x1xf32>
    %cst_31 = arith.constant 8.000000e+00 : f32
    %72 = vector.broadcast %cst_31 : f32 to vector<16x1xf32>
    %73 = arith.divf %71, %72 : vector<16x1xf32>
    %74 = arith.mulf %68, %68 : vector<16x1xf32>
    %75 = arith.subf %73, %74 : vector<16x1xf32>
    %cst_32 = arith.constant 0.000000e+00 : f32
    %76 = vector.broadcast %cst_32 : f32 to vector<16x1xf32>
    %77 = arith.maximumf %75, %76 : vector<16x1xf32>
    %78 = vector.broadcast %68 : vector<16x1xf32> to vector<16x8xf32>
    %79 = arith.subf %62, %78 : vector<16x8xf32>
    %cst_33 = arith.constant 9.99999974E-6 : f32
    %80 = vector.broadcast %cst_33 : f32 to vector<16x1xf32>
    %81 = arith.addf %77, %80 : vector<16x1xf32>
    %82 = math.rsqrt %81 : vector<16x1xf32>
    %83 = vector.broadcast %82 : vector<16x1xf32> to vector<16x8xf32>
    %84 = arith.mulf %79, %83 : vector<16x8xf32>
    %85 = vector.broadcast %63 : vector<16x1xf32> to vector<16x8xf32>
    %86 = arith.mulf %84, %85 : vector<16x8xf32>
    %87 = vector.broadcast %64 : vector<16x1xf32> to vector<16x8xf32>
    %88 = arith.addf %86, %87 : vector<16x8xf32>
    %cst_34 = arith.constant 0.000000e+00 : f32
    %89 = vector.broadcast %cst_34 : f32 to vector<16x8xf32>
    %90 = arith.maximumf %88, %89 : vector<16x8xf32>
    %c80 = arith.constant 80 : index
    %c0_35 = arith.constant 0 : index
    %91 = vector.load %arg1[%c80, %c0_35] : memref<81x32xf32, #tpu.memory_space<vmem>>, vector<1x16xf32>
    %cst_36 = arith.constant dense<0.000000e+00> : vector<1x8xf32>
    %92 = tpu.matmul %91, %90, %cst_36 {dimension_numbers = #tpu.dot_dimension_numbers<[1], [0], [0], [1], [0, 0, 1, 1], [], []>} : vector<1x16xf32>, vector<16x8xf32>, vector<1x8xf32> -> vector<1x8xf32>
    %c0_37 = arith.constant 0 : index
    %c6 = arith.constant 6 : index
    %93 = vector.load %arg2[%c0_37, %c6] : memref<32x7xf32, #tpu.memory_space<vmem>>, vector<1x1xf32>
    %94 = vector.broadcast %93 : vector<1x1xf32> to vector<1x8xf32>
    %95 = arith.addf %92, %94 : vector<1x8xf32>
    %c0_38 = arith.constant 0 : index
    %c0_39 = arith.constant 0 : index
    %96 = vector.load %arg3[%c0_38, %c0_39] : memref<1x8xf32, #tpu.memory_space<vmem>>, vector<1x8xf32>
    tpu.vector_store %arg3[%c0_38, %c0_39], %95 {strides = array<i32>} : memref<1x8xf32, #tpu.memory_space<vmem>>, vector<1x8xf32>,
    return
  }
}

</mosaic_0001>

<bundles_post_ra>
// kernel: tpu_custom_call.1
= control target key start
LH: loop header
LB: loop body
LE: loop exit
PB: predicated region body
PF: predicated region fallthrough
CT: control target
= control target key end

     0   :  { %vm21_vm0 = vcmask 130048   ;;  %s1025_s0 = inlined_call_operand.vmem [shape: f32[16,8], index: 0, kind: input, shape index: {}]   ;;  %s1026_s1 = inlined_call_operand.vmem [shape: f32[81,32], index: 1, kind: input, shape index: {}]   ;;  %s1027_s2 = inlined_call_operand.vmem [shape: f32[32,7], index: 2, kind: input, shape index: {}]   ;;  %s1028_s3 = inlined_call_operand.hbm [shape: f32[1,8], index: 3, kind: output, shape index: {}]  }
   0x1   :  { %v16_v0 = vld [vmem:[%s1025_s0 + $0x8] sm:$0xff]  ;;  %v15_v1 = vld [vmem:[%s1025_s0] sm:$0xff] }
   0x2   :  { %v17_v2 = vld [vmem:[%s1026_s1] sm:$0xff]  ;;  %718 = vmatprep.subr.mxu0 %v16_v0  ;;  %v18_v3 = vld [vmem:[%s1026_s1 + $0x8] sm:$0xff] }
   0x3   :  { %722 = vmatprep.mubr.msk.f32.mxu0 %vm21_vm0, %v17_v2  ;;  %719 = vmatpush3.msra.mxu0 %v16_v0 }
   0x4   :  { %8 = vsyncpa [#allocation3], 0  ;;  %720 = vmatprep.subr.mxu0 %v15_v1  ;;  %v19_v4 = vld [vmem:[%s1026_s1 + $0x10] sm:$0xff]  ;;  %v20_v5 = vld [vmem:[%s1026_s1 + $0x18] sm:$0xff]  ;;  %v831_v6 = vmov 0   ;;  %vm123_vm1 = vcmask 64512  }
   0x5   :  { %721 = vmatpush3.msra.mxu0 %v15_v1  ;;  %771 = vset.pattern.permute.xlu1 %v831_v6  ;;  %v914_v23 = vld [vmem:[%s1027_s2 + $0x10] sm:$0xff]  ;;  %v920_v24 = vld [vmem:[%s1027_s2 + $0x18] sm:$0xff]  ;;  %v832_v25 = vmov 1   ;;  %v926_v26 = vld [vmem:[%s1027_s2 + $0x8] sm:$0xff]  ;;  %vm241_vm2 = vcmask 261120   ;;  %vm838_vm3 = vmmov 0  }
   0x6   :  { %723 = vmatmul.mubr.msk.f32.vlgmr.msra.gmra.mxu0 %vm21_vm0, %v18_v3  ;;  %770 = vset.pattern.permute.xlu0 %v831_v6  ;;  %v934_v27 = vld [vmem:[%s1027_s2] sm:$0xff]  ;;  %s840_s19 = smov [#allocation2]   ;;  %vm668_vm4 = vcmask 57344  }
   0x7   :  { %725 = vmatprep.mubr.msk.f32.mxu0 %vm21_vm0, %v19_v4  ;;  %v237_v28 = vld [vmem:[%s1026_s1 + $0x20] sm:$0xff]  ;;  %s676_s20 = sshll.u32 %s840_s19, 4  ;;  %s677_s20 = int_to_ptr.vmem [resolvable:$true] %s676_s20 }
   0x8   :  { %736 = vmatprep.mubr.msk.f32.mxu1 %vm241_vm2, %v237_v28  ;;  %s809_s21 = scalar_lea.vmem %s677_s20, 16  ;;  %s813_s0 = scalar_lea.vmem %s677_s20, 32 }
   0x9   :  { %p810_p0 = scmp.ne.s32.totalorder %s677_s20, %s809_s21  ;;  %p814_p1 = scmp.lt.s32.totalorder %s677_s20, %s677_s20 }
   0xa   :  { %726 = vmatmul.mubr.msk.f32.gmra.mxu0 %vm21_vm0, %v20_v5  ;;  %p815_p2 = scmp.lt.s32.totalorder %s813_s0, %s809_s21 }
   0xc   :  { %p816_p3 = por %p815_p2, %p814_p1 }
   0xe   :  { %p817_p4 = pnand %p816_p3, %p810_p0 }
  0xc6   :  { %v883_v7 = vpop.f32.mrf.mxu0 }
  0xc7   :  { %v127_v8 = vsel %vm123_vm1, %v883_v7, 0.0  ;;  %v142_v9 = vmul.f32 %v883_v7, %v883_v7 }
  0xc8   :  { %128 = vadd.xlane.f32.xlu1 %v127_v8  ;;  %v889_v10 = vpop.f32.mrf.mxu0 }
  0xc9   :  { %v148_v11 = vsel %vm123_vm1, %v142_v9, 0.0  ;;  %v124_v13 = vsel %vm123_vm1, %v889_v10, 0.0  ;;  %v141_v15 = vmul.f32 %v889_v10, %v889_v10 }
  0xca   :  { %149 = vadd.xlane.f32.xlu0 %v148_v11  ;;  %v892_v12 = vpop.f32.mrf.mxu0 }
  0xcb   :  { %v133_v14 = vsel %vm123_vm1, %v892_v12, 0.0  ;;  %v145_v17 = vsel %vm123_vm1, %v141_v15, 0.0  ;;  %v144_v18 = vmul.f32 %v892_v12, %v892_v12 }
  0xcc   :  { %125 = vadd.xlane.f32.xlu1 %v124_v13  ;;  %v900_v16 = vpop.f32.mrf.mxu0 }
  0xcd   :  { %v130_v19 = vsel %vm123_vm1, %v900_v16, 0.0  ;;  %v143_v20 = vmul.f32 %v900_v16, %v900_v16  ;;  %v154_v21 = vsel %vm123_vm1, %v144_v18, 0.0 }
  0xce   :  { %134 = vadd.xlane.f32.xlu0 %v133_v14 }
  0xcf   :  { %v151_v22 = vsel %vm123_vm1, %v143_v20, 0.0 }
  0xd0   :  { %146 = vadd.xlane.f32.xlu1 %v145_v17 }
  0xd2   :  { %131 = vadd.xlane.f32.xlu0 %v130_v19 }
  0xd4   :  { %155 = vadd.xlane.f32.xlu1 %v154_v21 }
  0xd6   :  { %152 = vadd.xlane.f32.xlu0 %v151_v22 }
  0xe5   :  { %201 = vperm.xlu1 %771, %v914_v23  }
  0xe9   :  { %772 = vset.pattern.permute.xlu1 %v832_v25 }
  0xea   :  { %226 = vperm.xlu1 %772, %v920_v24  }
  0xec   :  { %206 = vperm.xlu0 %770, %v920_v24  }
  0xee   :  { %773 = vset.pattern.permute.xlu1 %v831_v6 }
  0xef   :  { %196 = vperm.xlu1 %773, %v926_v26  }
  0xf3   :  { %774 = vset.pattern.permute.xlu1 %v832_v25 }
  0xf4   :  { %222 = vperm.xlu1 %774, %v914_v23  }
  0xf8   :  { %775 = vset.pattern.permute.xlu1 %v831_v6 }
  0xf9   :  { %191 = vperm.xlu1 %775, %v934_v27  }
  0xfd   :  { %776 = vset.pattern.permute.xlu1 %v832_v25 }
  0xfe   :  { %218 = vperm.xlu1 %776, %v926_v26  }
 0x102   :  { %214 = vperm.xlu1 %776, %v934_v27  }
 0x151   :  { %v129_v29 = vpop.xlane.xlu1 %128 }
 0x152   :  { %v138_v30 = vmul.f32 0.125, %v129_v29 }
 0x153   :  { %v150_v31 = vpop.xlane.xlu0 %149 }
 0x154   :  { %v162_v32 = vmul.f32 %v138_v30, %v138_v30  ;;  %v158_v33 = vmul.f32 0.125, %v150_v31  ;;  %v174_v2 = vsub.f32 %v883_v7, %v138_v30 }
 0x155   :  { %v126_v34 = vpop.xlane.xlu1 %125 }
 0x156   :  { %v166_v36 = vsub.f32 %v158_v33, %v162_v32  ;;  %v137_v37 = vmul.f32 0.125, %v126_v34  ;;  %v239_v34 = vld [vmem:[%s1026_s1 + $0x30] sm:$0xff] }
 0x157   :  { %v135_v35 = vpop.xlane.xlu0 %134 }
 0x158   :  { %v140_v39 = vmul.f32 0.125, %v135_v35  ;;  %v170_v42 = vmax.f32 %v166_v36, 0.0  ;;  %v161_v43 = vmul.f32 %v137_v37, %v137_v37  ;;  %v173_v18 = vsub.f32 %v889_v10, %v137_v37  ;;  %v238_v10 = vld [vmem:[%s1026_s1 + $0x28] sm:$0xff]  ;;  %v240_v35 = vld [vmem:[%s1026_s1 + $0x38] sm:$0xff] }
 0x159   :  { %v147_v38 = vpop.xlane.xlu1 %146  ;;  %v833_v36 = vmov 2  }
 0x15a   :  { %v157_v40 = vmul.f32 0.125, %v147_v38  ;;  %v164_v46 = vmul.f32 %v140_v39, %v140_v39  ;;  %v178_v50 = vadd.f32 1e-05, %v170_v42  ;;  %v176_v3 = vsub.f32 %v892_v12, %v140_v39  ;;  %778 = vset.pattern.permute.xlu1 %v833_v36  ;;  %777 = vset.pattern.permute.xlu0 %v833_v36 }
 0x15b   :  { %v132_v41 = vpop.xlane.xlu0 %131 }
 0x15c   :  { %v139_v44 = vmul.f32 0.125, %v132_v41  ;;  %v165_v47 = vsub.f32 %v157_v40, %v161_v43  ;;  %789 = vrsqrt.f32 %v178_v50 }
 0x15d   :  { %v156_v45 = vpop.xlane.xlu1 %155 }
 0x15e   :  { %v160_v48 = vmul.f32 0.125, %v156_v45  ;;  %v163_v51 = vmul.f32 %v139_v44, %v139_v44  ;;  %v169_v55 = vmax.f32 %v165_v47, 0.0  ;;  %v175_v6 = vsub.f32 %v900_v16, %v139_v44 }
 0x15f   :  { %v153_v49 = vpop.xlane.xlu0 %152 }
 0x160   :  { %v168_v52 = vsub.f32 %v160_v48, %v164_v46  ;;  %v159_v53 = vmul.f32 0.125, %v153_v49  ;;  %v177_v61 = vadd.f32 1e-05, %v169_v55 }
 0x161   :  { %v202_v54 = vpop.permute.xlu1 %201 }
 0x162   :  { %v172_v56 = vmax.f32 %v168_v52, 0.0  ;;  %v167_v57 = vsub.f32 %v159_v53, %v163_v51  ;;  %v834_v53 = vmov 3  }
 0x164   :  { %v180_v58 = vadd.f32 1e-05, %v172_v56  ;;  %v171_v59 = vmax.f32 %v167_v57, 0.0 }
 0x165   :  { %v227_v60 = vpop.permute.xlu1 %226 }
 0x166   :  { %791 = vrsqrt.f32 %v180_v58  ;;  %v179_v62 = vadd.f32 1e-05, %v171_v59 }
 0x167   :  { %v207_v5 = vpop.permute.xlu0 %206 }
 0x168   :  { %793 = vrsqrt.f32 %v179_v62 }
 0x169   :  { %795 = vrsqrt.f32 %v177_v61  ;;  %v790_v1 = vpop.eup %789 }
 0x16a   :  { %v197_v63 = vpop.permute.xlu1 %196  ;;  %v186_v8 = vmul.f32 %v790_v1, %v174_v2 }
 0x16c   :  { %v210_v20 = vmul.f32 %v197_v63, %v186_v8 }
 0x16f   :  { %v223_v0 = vpop.permute.xlu1 %222 }
 0x173   :  { %v792_v4 = vpop.eup %791 }
 0x174   :  { %v192_v9 = vpop.permute.xlu1 %191  ;;  %v188_v11 = vmul.f32 %v792_v4, %v176_v3 }
 0x175   :  { %v794_v13 = vpop.eup %793 }
 0x176   :  { %v187_v14 = vmul.f32 %v794_v13, %v175_v6  ;;  %v212_v15 = vmul.f32 %v207_v5, %v188_v11  ;;  %v796_v17 = vpop.eup %795 }
 0x177   :  { %v185_v25 = vmul.f32 %v796_v17, %v173_v18 }
 0x178   :  { %v211_v19 = vmul.f32 %v202_v54, %v187_v14  ;;  %v232_v21 = vadd.f32 %v227_v60, %v212_v15  ;;  %v447_v54 = vld [vmem:[%s1026_s1 + $0x40] sm:$0xff] }
 0x179   :  { %v219_v22 = vpop.permute.xlu1 %218  ;;  %v209_v30 = vmul.f32 %v192_v9, %v185_v25  ;;  %750 = vmatprep.mubr.msk.f32.mxu0 %vm241_vm2, %v447_v54 }
 0x17a   :  { %v231_v7 = vadd.f32 %v223_v0, %v211_v19  ;;  %v230_v12 = vadd.f32 %v219_v22, %v210_v20  ;;  %v236_v28 = vmax.f32 %v232_v21, 0.0 }
 0x17c   :  { %v235_v29 = vmax.f32 %v231_v7, 0.0  ;;  %728 = vmatprep.subr.mxu1 %v236_v28  ;;  %v234_v31 = vmax.f32 %v230_v12, 0.0 }
 0x17d   :  { %v215_v16 = vpop.permute.xlu1 %214  ;;  %729 = vmatpush3.msra.mxu1 %v236_v28 }
 0x17e   :  { %v229_v32 = vadd.f32 %v215_v16, %v209_v30  ;;  %730 = vmatprep.subr.mxu1 %v235_v29 }
 0x17f   :  { %731 = vmatpush3.msra.mxu1 %v235_v29 }
 0x180   :  { %v233_v33 = vmax.f32 %v229_v32, 0.0  ;;  %732 = vmatprep.subr.mxu1 %v234_v31 }
 0x181   :  { %733 = vmatpush3.msra.mxu1 %v234_v31 }
 0x182   :  { %734 = vmatprep.subr.mxu1 %v233_v33 }
 0x183   :  { %735 = vmatpush3.msra.mxu1 %v233_v33 }
 0x184   :  { %737 = vmatmul.mubr.msk.f32.vlgmr.msra.gmra.mxu1 %vm241_vm2, %v238_v10 }
 0x185   :  { %739 = vmatprep.mubr.msk.f32.mxu1 %vm241_vm2, %v239_v34 }
 0x188   :  { %740 = vmatmul.mubr.msk.f32.gmra.mxu1 %vm241_vm2, %v240_v35 }
 0x244   :  { %v959_v37 = vpop.f32.mrf.mxu1 }
 0x245   :  { %v342_v38 = vsel %vm123_vm1, %v959_v37, 0.0  ;;  %v356_v39 = vmul.f32 %v959_v37, %v959_v37 }
 0x246   :  { %343 = vadd.xlane.f32.xlu1 %v342_v38  ;;  %v965_v40 = vpop.f32.mrf.mxu1 }
 0x247   :  { %v362_v41 = vsel %vm123_vm1, %v356_v39, 0.0  ;;  %v339_v43 = vsel %vm123_vm1, %v965_v40, 0.0  ;;  %v355_v48 = vmul.f32 %v965_v40, %v965_v40 }
 0x248   :  { %363 = vadd.xlane.f32.xlu0 %v362_v41  ;;  %v968_v42 = vpop.f32.mrf.mxu1 }
 0x249   :  { %v358_v46 = vmul.f32 %v968_v42, %v968_v42  ;;  %v348_v47 = vsel %vm123_vm1, %v968_v42, 0.0  ;;  %v359_v51 = vsel %vm123_vm1, %v355_v48, 0.0 }
 0x24a   :  { %340 = vadd.xlane.f32.xlu1 %v339_v43  ;;  %v972_v44 = vpop.f32.mrf.mxu1 }
 0x24b   :  { %v345_v45 = vsel %vm123_vm1, %v972_v44, 0.0  ;;  %v357_v49 = vmul.f32 %v972_v44, %v972_v44  ;;  %v368_v50 = vsel %vm123_vm1, %v358_v46, 0.0 }
 0x24c   :  { %346 = vadd.xlane.f32.xlu0 %v345_v45 }
 0x24d   :  { %v365_v52 = vsel %vm123_vm1, %v357_v49, 0.0 }
 0x24e   :  { %349 = vadd.xlane.f32.xlu1 %v348_v47 }
 0x250   :  { %369 = vadd.xlane.f32.xlu0 %v368_v50 }
 0x252   :  { %360 = vadd.xlane.f32.xlu1 %v359_v51 }
 0x254   :  { %366 = vadd.xlane.f32.xlu0 %v365_v52 }
 0x263   :  { %412 = vperm.xlu1 %778, %v914_v23  }
 0x267   :  { %779 = vset.pattern.permute.xlu1 %v834_v53 }
 0x268   :  { %436 = vperm.xlu1 %779, %v920_v24  }
 0x26a   :  { %416 = vperm.xlu0 %777, %v920_v24   ;;  %v835_v24 = vmov 4  }
 0x26c   :  { %780 = vset.pattern.permute.xlu1 %v833_v36 }
 0x26d   :  { %408 = vperm.xlu1 %780, %v926_v26  }
 0x26e   :  { %785 = vset.pattern.permute.xlu0 %v835_v24 }
 0x271   :  { %781 = vset.pattern.permute.xlu1 %v834_v53 }
 0x272   :  { %432 = vperm.xlu1 %781, %v914_v23  }
 0x276   :  { %782 = vset.pattern.permute.xlu1 %v833_v36 }
 0x277   :  { %404 = vperm.xlu1 %782, %v934_v27  }
 0x27b   :  { %783 = vset.pattern.permute.xlu1 %v834_v53 }
 0x27c   :  { %428 = vperm.xlu1 %783, %v926_v26  }
 0x280   :  { %424 = vperm.xlu1 %783, %v934_v27  }
 0x284   :  { %784 = vset.pattern.permute.xlu1 %v835_v24 }
 0x285   :  { %571 = vperm.xlu1 %784, %v926_v26  }
 0x2cf   :  { %v344_v23 = vpop.xlane.xlu1 %343 }
 0x2d0   :  { %v352_v55 = vmul.f32 0.125, %v344_v23 }
 0x2d1   :  { %v364_v56 = vpop.xlane.xlu0 %363 }
 0x2d2   :  { %v376_v57 = vmul.f32 %v352_v55, %v352_v55  ;;  %v372_v58 = vmul.f32 0.125, %v364_v56  ;;  %v388_v34 = vsub.f32 %v959_v37, %v352_v55 }
 0x2d3   :  { %v341_v59 = vpop.xlane.xlu1 %340 }
 0x2d4   :  { %v380_v60 = vsub.f32 %v372_v58, %v376_v57  ;;  %v351_v63 = vmul.f32 0.125, %v341_v59  ;;  %v836_v57 = vmov 5  }
 0x2d5   :  { %v347_v61 = vpop.xlane.xlu0 %346  ;;  %786 = vset.pattern.permute.xlu1 %v836_v57 }
 0x2d6   :  { %v384_v1 = vmax.f32 %v380_v60, 0.0  ;;  %v353_v3 = vmul.f32 0.125, %v347_v61  ;;  %v375_v8 = vmul.f32 %v351_v63, %v351_v63  ;;  %v387_v46 = vsub.f32 %v965_v40, %v351_v63  ;;  %v448_v40 = vld [vmem:[%s1026_s1 + $0x48] sm:$0xff] }
 0x2d7   :  { %v350_v62 = vpop.xlane.xlu1 %349 }
 0x2d8   :  { %v354_v0 = vmul.f32 0.125, %v350_v62  ;;  %v392_v13 = vadd.f32 1e-05, %v384_v1  ;;  %v377_v15 = vmul.f32 %v353_v3, %v353_v3  ;;  %v389_v38 = vsub.f32 %v972_v44, %v353_v3  ;;  %v589_v3 = vld [vmem:[%s1027_s2] sm:$0x1] }
 0x2d9   :  { %v370_v2 = vpop.xlane.xlu0 %369 }
 0x2da   :  { %v378_v4 = vmul.f32 %v354_v0, %v354_v0  ;;  %v374_v5 = vmul.f32 0.125, %v370_v2  ;;  %797 = vrsqrt.f32 %v392_v13  ;;  %v390_v32 = vsub.f32 %v968_v42, %v354_v0 }
 0x2db   :  { %v361_v6 = vpop.xlane.xlu1 %360  ;;  %v837_v2 = vmov 0.0  }
 0x2dc   :  { %v382_v9 = vsub.f32 %v374_v5, %v378_v4  ;;  %v371_v11 = vmul.f32 0.125, %v361_v6  ;;  %v839_v4 = vmov 6  }
 0x2dd   :  { %v367_v14 = vpop.xlane.xlu0 %366 }
 0x2de   :  { %v386_v17 = vmax.f32 %v382_v9, 0.0  ;;  %v379_v18 = vsub.f32 %v371_v11, %v375_v8  ;;  %v373_v19 = vmul.f32 0.125, %v367_v14 }
 0x2df   :  { %v413_v20 = vpop.permute.xlu1 %412 }
 0x2e0   :  { %v394_v21 = vadd.f32 1e-05, %v386_v17  ;;  %v383_v22 = vmax.f32 %v379_v18, 0.0  ;;  %v381_v7 = vsub.f32 %v373_v19, %v377_v15 }
 0x2e2   :  { %799 = vrsqrt.f32 %v394_v21  ;;  %v391_v25 = vadd.f32 1e-05, %v383_v22  ;;  %v385_v12 = vmax.f32 %v381_v7, 0.0 }
 0x2e3   :  { %v437_v28 = vpop.permute.xlu1 %436 }
 0x2e4   :  { %v393_v29 = vadd.f32 1e-05, %v385_v12  ;;  %801 = vrsqrt.f32 %v391_v25 }
 0x2e5   :  { %v417_v10 = vpop.permute.xlu0 %416 }
 0x2e6   :  { %803 = vrsqrt.f32 %v393_v29 }
 0x2e7   :  { %v798_v31 = vpop.eup %797 }
 0x2e8   :  { %v409_v30 = vpop.permute.xlu1 %408  ;;  %v400_v39 = vmul.f32 %v798_v31, %v388_v34 }
 0x2ea   :  { %v420_v50 = vmul.f32 %v409_v30, %v400_v39 }
 0x2ed   :  { %v433_v16 = vpop.permute.xlu1 %432 }
 0x2ef   :  { %v800_v33 = vpop.eup %799 }
 0x2f0   :  { %v402_v35 = vmul.f32 %v800_v33, %v390_v32 }
 0x2f1   :  { %v802_v36 = vpop.eup %801 }
 0x2f2   :  { %v422_v41 = vmul.f32 %v417_v10, %v402_v35  ;;  %v405_v43 = vpop.permute.xlu1 %404  ;;  %v399_v42 = vmul.f32 %v802_v36, %v387_v46 }
 0x2f3   :  { %v804_v45 = vpop.eup %803 }
 0x2f4   :  { %v401_v47 = vmul.f32 %v804_v45, %v389_v38  ;;  %v442_v48 = vadd.f32 %v437_v28, %v422_v41  ;;  %v419_v24 = vmul.f32 %v405_v43, %v399_v42  ;;  %v588_v41 = vld [vmem:[%s1026_s1 + $0x50] sm:$0x1] }
 0x2f6   :  { %v421_v49 = vmul.f32 %v413_v20, %v401_v47  ;;  %v446_v51 = vmax.f32 %v442_v48, 0.0 }
 0x2f7   :  { %v429_v52 = vpop.permute.xlu1 %428 }
 0x2f8   :  { %v441_v53 = vadd.f32 %v433_v16, %v421_v49  ;;  %v440_v54 = vadd.f32 %v429_v52, %v420_v50  ;;  %742 = vmatprep.subr.mxu0 %v446_v51 }
 0x2f9   :  { %743 = vmatpush3.msra.mxu0 %v446_v51 }
 0x2fa   :  { %v445_v37 = vmax.f32 %v441_v53, 0.0  ;;  %v444_v23 = vmax.f32 %v440_v54, 0.0 }
 0x2fb   :  { %v425_v44 = vpop.permute.xlu1 %424 }
 0x2fc   :  { %v439_v55 = vadd.f32 %v425_v44, %v419_v24  ;;  %744 = vmatprep.subr.mxu0 %v445_v37 }
 0x2fd   :  { %745 = vmatpush3.msra.mxu0 %v445_v37 }
 0x2fe   :  { %v443_v56 = vmax.f32 %v439_v55, 0.0  ;;  %746 = vmatprep.subr.mxu0 %v444_v23 }
 0x2ff   :  { %747 = vmatpush3.msra.mxu0 %v444_v23 }
 0x300   :  { %748 = vmatprep.subr.mxu0 %v443_v56  ;;  %v572_v5 = vpop.permute.xlu1 %571 }
 0x301   :  { %749 = vmatpush3.msra.mxu0 %v443_v56 }
 0x302   :  { %751 = vmatmul.mubr.msk.f32.vlgmr.msra.gmra.mxu0 %vm241_vm2, %v448_v40  ;;  %753 = vmatprep.subr.mxu0 %v837_v2 }
 0x303   :  { %757 = vmatprep.mubr.msk.f32.mxu0 %vm838_vm3, %v837_v2 }
 0x3c2   :  { %v752_v58 = vpop.f32.mrf.mxu0 }
 0x3c3   :  { %v535_v59 = vsel %vm123_vm1, %v752_v58, 0.0  ;;  %v541_v62 = vmul.f32 %v752_v58, %v752_v58 }
 0x3c4   :  { %536 = vadd.xlane.f32.xlu1 %v535_v59  ;;  %v521_v60 = vpop.f32.mrf.mxu0 }
 0x3c5   :  { %v532_v61 = vsel %vm123_vm1, %v521_v60, 0.0  ;;  %v545_v63 = vsel %vm123_vm1, %v541_v62, 0.0  ;;  %v540_v0 = vmul.f32 %v521_v60, %v521_v60 }
 0x3c6   :  { %533 = vadd.xlane.f32.xlu0 %v532_v61 }
 0x3c7   :  { %v542_v1 = vsel %vm123_vm1, %v540_v0, 0.0 }
 0x3ca   :  { %546 = vadd.xlane.f32.xlu0 %v545_v63 }
 0x3ce   :  { %543 = vadd.xlane.f32.xlu0 %v542_v1 }
 0x3d5   :  { %581 = vperm.xlu1 %786, %v926_v26  }
 0x3d9   :  { %577 = vperm.xlu1 %786, %v934_v27  }
 0x3dd   :  { %787 = vset.pattern.permute.xlu1 %v839_v4 }
 0x3de   :  { %592 = vperm.xlu1 %787, %v589_v3  }
 0x3e4   :  { %566 = vperm.xlu0 %785, %v934_v27  }
 0x3e8   :  { %788 = vset.pattern.permute.xlu0 %v839_v4 }
 0x44d   :  { %v537_v6 = vpop.xlane.xlu1 %536 }
 0x44e   :  { %v539_v26 = vmul.f32 0.125, %v537_v6 }
 0x44f   :  { %v534_v8 = vpop.xlane.xlu0 %533 }
 0x450   :  { %v551_v11 = vmul.f32 %v539_v26, %v539_v26  ;;  %v538_v13 = vmul.f32 0.125, %v534_v8  ;;  %v557_v25 = vsub.f32 %v752_v58, %v539_v26 }
 0x451   :  { %v582_v29 = vpop.permute.xlu1 %581 }
 0x452   :  { %v550_v17 = vmul.f32 %v538_v13, %v538_v13  ;;  %v556_v30 = vsub.f32 %v521_v60, %v538_v13 }
 0x453   :  { %v547_v9 = vpop.xlane.xlu0 %546 }
 0x454   :  { %v549_v27 = vmul.f32 0.125, %v547_v9 }
 0x455   :  { %v578_v36 = vpop.permute.xlu1 %577 }
 0x456   :  { %v553_v14 = vsub.f32 %v549_v27, %v551_v11 }
 0x457   :  { %v544_v15 = vpop.xlane.xlu0 %543 }
 0x458   :  { %v555_v18 = vmax.f32 %v553_v14, 0.0  ;;  %v548_v19 = vmul.f32 0.125, %v544_v15 }
 0x459   :  { %v593_v43 = vpop.permute.xlu1 %592 }
 0x45a   :  { %v559_v20 = vadd.f32 1e-05, %v555_v18  ;;  %v552_v21 = vsub.f32 %v548_v19, %v550_v17 }
 0x45c   :  { %805 = vrsqrt.f32 %v559_v20  ;;  %v554_v22 = vmax.f32 %v552_v21, 0.0 }
 0x45e   :  { %v558_v7 = vadd.f32 1e-05, %v554_v22 }
 0x45f   :  { %v567_v32 = vpop.permute.xlu0 %566 }
 0x460   :  { %807 = vrsqrt.f32 %v558_v7 }
 0x469   :  { %v806_v12 = vpop.eup %805 }
 0x46a   :  { %v563_v28 = vmul.f32 %v806_v12, %v557_v25 }
 0x46c   :  { %v575_v16 = vmul.f32 %v572_v5, %v563_v28 }
 0x46d   :  { %v808_v31 = vpop.eup %807 }
 0x46e   :  { %v585_v33 = vadd.f32 %v582_v29, %v575_v16  ;;  %v562_v10 = vmul.f32 %v808_v31, %v556_v30 }
 0x470   :  { %v587_v34 = vmax.f32 %v585_v33, 0.0  ;;  %v574_v35 = vmul.f32 %v567_v32, %v562_v10 }
 0x472   :  { %v584_v38 = vadd.f32 %v578_v36, %v574_v35  ;;  %754 = vmatpush3.msra.mxu0 %v587_v34 }
 0x473   :  { %755 = vmatprep.subr.mxu0 %v837_v2 }
 0x474   :  { %v586_v39 = vmax.f32 %v584_v38, 0.0 }
 0x476   :  { %756 = vmatpush3.msra.mxu0 %v586_v39 }
 0x477   :  { %758 = vmatmul.mubr.msk.f32.vlgmr.msra.gmra.mxu0 %vm21_vm0, %v588_v41 }
 0x537   :  { %v664_v45 = vpop.f32.mrf.mxu0 }
 0x538   :  { %v665_v46 = vadd.f32 %v664_v45, %v593_v43 }
 0x539   :  { %v759_v47 = vpop.f32.mrf.mxu0 }
 0x53a   :  { %669 = vst.msk [vmem:[#allocation2] sm:$0x1] %vm668_vm4, %v665_v46 }
 0x53b   :  { %820 = shalt.err (!%p817_p4)
}
 0x53c   :  { %679 = dma.vmem_to_hbm [thread:$0]  %s677_s20, 16, %s1028_s3, [#allocation3]  }
 0x53d   :  { %829 = dma.done.wait [#allocation3], 16  }
 0x53e   :  { %830 = vsyncadd [#allocation3], 4294967280 }
 0x53f   :  { %683 = vsyncpa [#allocation3], 1 }

</bundles_post_ra>
